<compile_context>
chip_gen: v7x
topology: tpu7x:2x2x1
jax: 0.10.0
libtpu: 0.0.40
codegen_flags: <defaults>
</compile_context>

<pallas_src>
import functools

import jax
import jax.numpy as jnp
import numpy as np
from jax.experimental import pallas as pl
from jax.experimental.pallas import tpu as pltpu


# ----------------------------- in-kernel layers -----------------------------

def _enc_layer(x, w_ref, mask_prev):
    """Packed Conv1d(k=3, s=2, p=1).

    x: (R, P*Cin)  -- R rows, each holding P consecutive positions.
    w_ref: ((P+1)*Cin + 1, (P//2)*Cout) block-banded weight; rows 0..Cin-1 are
    the tap reading the previous row's last position, last row is the bias.
    """
    rows, xl = x.shape
    wr, _ = w_ref.shape
    cin = wr - 1 - xl
    # Static slices on the ref: zero runtime cost, avoids full-load-then-slice.
    w_prev = w_ref[0:cin, :]
    w_main = w_ref[cin:wr - 1, :]
    bias = w_ref[wr - 1:wr, :]

    tail = x[:, xl - cin:]                       # last packed position per row
    prev = jnp.concatenate(
        [jnp.zeros((1, cin), jnp.float32), tail[:rows - 1, :]], axis=0)
    prev = prev * mask_prev                      # zero across sample boundaries

    out = jnp.dot(x, w_main, preferred_element_type=jnp.float32)
    if cin == 1:
        # Degenerate K=1 "matmul" is just an outer product -> keep it on the VPU.
        out = out + prev * w_prev
    else:
        out = out + jnp.dot(prev, w_prev, preferred_element_type=jnp.float32)
    return out + bias


def _dec_layer(x, w_ref, mask_next):
    """Packed ConvTranspose1d(k=3, s=2, p=1, output_padding=1).

    x: (R, P*Cin).  w_ref: ((P+1)*Cin + 1, 2P*Cout); rows P*Cin..(P+1)*Cin-1 are
    the tap reading the next row's first position, last row is the bias.
    """
    rows, xl = x.shape
    wr, _ = w_ref.shape
    cin = wr - 1 - xl
    w_main = w_ref[0:xl, :]
    w_next = w_ref[xl:wr - 1, :]
    bias = w_ref[wr - 1:wr, :]

    head = x[:, 0:cin]                           # first packed position per row
    nxt = jnp.concatenate(
        [head[1:, :], jnp.zeros((1, cin), jnp.float32)], axis=0)
    nxt = nxt * mask_next                        # zero across sample boundaries

    out = jnp.dot(x, w_main, preferred_element_type=jnp.float32)
    if cin == 1:
        out = out + nxt * w_next
    else:
        out = out + jnp.dot(nxt, w_next, preferred_element_type=jnp.float32)
    return out + bias


def _cae_kernel(x_ref, we1, we2, we3, wd1, wd2, wd3, o_ref, *, lw):
    rows = x_ref.shape[0]
    ridx = jax.lax.broadcasted_iota(jnp.int32, (rows, 1), 0)
    mask_prev = (ridx % lw != 0).astype(jnp.float32)        # first row of a sample
    mask_next = (ridx % lw != lw - 1).astype(jnp.float32)   # last row of a sample

    x = x_ref[...].astype(jnp.float32)
    # encoder
    h = jnp.maximum(_enc_layer(x, we1, mask_prev), 0.0)     # (R, 4*16)
    h = jnp.maximum(_enc_layer(h, we2, mask_prev), 0.0)     # (R, 2*32)
    z = jnp.maximum(_enc_layer(h, we3, mask_prev), 0.0)     # (R, latent)
    # decoder
    d = jnp.maximum(_dec_layer(z, wd1, mask_next), 0.0)     # (R, 2*32)
    d = jnp.maximum(_dec_layer(d, wd2, mask_next), 0.0)     # (R, 4*16)
    y = jnp.tanh(_dec_layer(d, wd3, mask_next))             # (R, 8)
    o_ref[...] = y.astype(o_ref.dtype)


# ------------------------- host-side weight packing --------------------------

def _pack_enc(w, b, p):
    """Conv1d weight (Cout, Cin, 3), bias (Cout,) -> ((P+1)*Cin+1, (P//2)*Cout)."""
    w = np.asarray(w, np.float32)
    b = np.asarray(b, np.float32)
    cout, cin, _ = w.shape
    wt = np.transpose(w, (2, 1, 0))              # (3, Cin, Cout): W_t
    wb = np.zeros(((p + 1) * cin + 1, (p // 2) * cout), np.float32)
    for r in range(p // 2):
        for t in range(3):
            j = 2 * r + t                        # X_ext slot: j=0 is prev-row tail
            wb[j * cin:(j + 1) * cin, r * cout:(r + 1) * cout] = wt[t]
    wb[-1, :] = np.tile(b, p // 2)
    return jnp.asarray(wb)


def _pack_dec(w, b, p):
    """ConvTranspose1d weight (Cin, Cout, 3), bias (Cout,) -> ((P+1)*Cin+1, 2P*Cout)."""
    w = np.asarray(w, np.float32)
    b = np.asarray(b, np.float32)
    cin, cout, _ = w.shape
    wt = np.transpose(w, (2, 0, 1))              # (3, Cin, Cout): V_t
    wd = np.zeros(((p + 1) * cin + 1, 2 * p * cout), np.float32)
    for r in range(p):
        wd[r * cin:(r + 1) * cin, 2 * r * cout:(2 * r + 1) * cout] = wt[1]             # even
        wd[r * cin:(r + 1) * cin, (2 * r + 1) * cout:(2 * r + 2) * cout] = wt[2]        # odd
        wd[(r + 1) * cin:(r + 2) * cin, (2 * r + 1) * cout:(2 * r + 2) * cout] = wt[0]  # odd
    wd[-1, :] = np.tile(b, 2 * p)
    return jnp.asarray(wd)


# --------------------------------- wrapper ----------------------------------

def _pick_bchunk(b, lw, target_rows=2048):
    """Largest divisor of b whose chunk keeps the matmul M dim <= target_rows
    (amortizing per-grid-step overhead) with a sublane-aligned block, or the
    whole batch."""
    for c in range(b, 0, -1):
        if b % c:
            continue
        if c * lw <= target_rows and (c == b or (c * lw) % 8 == 0):
            return c
    return b


def cae_forward(x_ncl, packed_weights):
    """x_ncl: (B, 1, L) float32 (PyTorch NCL layout). Returns (B, 1, L)."""
    b_dim, c_dim, length = x_ncl.shape
    assert c_dim == 1, "CAE expects a single input channel"
    assert length % 8 == 0, "length must be divisible by 8 (three stride-2 stages)"
    lw = length // 8

    # Phase-packed, row-major contiguous view: row r holds 8 consecutive samples.
    x2d = x_ncl.astype(jnp.float32).reshape(b_dim * lw, 8)

    bchunk = _pick_bchunk(b_dim, lw)
    nchunks = b_dim // bchunk
    rows_per_chunk = bchunk * lw

    in_specs = [pl.BlockSpec((rows_per_chunk, 8), lambda i: (i, 0))]
    for w in packed_weights:
        # Full-array block, constant index -> stays resident in VMEM across steps.
        in_specs.append(pl.BlockSpec(w.shape, lambda i: (0, 0)))

    out = pl.pallas_call(
        functools.partial(_cae_kernel, lw=lw),
        out_shape=jax.ShapeDtypeStruct((b_dim * lw, 8), jnp.float32),
        grid_spec=pltpu.PrefetchScalarGridSpec(
            num_scalar_prefetch=0,
            grid=(nchunks,),
            in_specs=in_specs,
            out_specs=pl.BlockSpec((rows_per_chunk, 8), lambda i: (i, 0)),
        ),
        compiler_params=pltpu.CompilerParams(
            dimension_semantics=("parallel",)),
    )(x2d, *packed_weights)

    return out.reshape(b_dim, 1, length)


# --------------------------- params & JAX reference --------------------------

def init_params(key, latent_dim):
    """Deterministic synthetic init (PyTorch-style uniform(+-1/sqrt(fan_in)))."""
    k = 3
    enc_dims = [(1, 16), (16, 32), (32, latent_dim)]
    dec_dims = [(latent_dim, 32), (32, 16), (16, 1)]
    keys = iter(jax.random.split(key, 12))

    torch_enc, torch_dec = [], []
    for cin, cout in enc_dims:                      # Conv1d weight: (Cout, Cin, K)
        bound = 1.0 / np.sqrt(cin * k)
        w = jax.random.uniform(next(keys), (cout, cin, k), jnp.float32, -bound, bound)
        b = jax.random.uniform(next(keys), (cout,), jnp.float32, -bound, bound)
        torch_enc.append((w, b))
    for cin, cout in dec_dims:                      # ConvTranspose1d weight: (Cin, Cout, K)
        bound = 1.0 / np.sqrt(cin * k)
        w = jax.random.uniform(next(keys), (cin, cout, k), jnp.float32, -bound, bound)
        b = jax.random.uniform(next(keys), (cout,), jnp.float32, -bound, bound)
        torch_dec.append((w, b))

    enc_p = (8, 4, 2)    # positions per packed row at each encoder layer's input
    dec_p = (1, 2, 4)    # positions per packed row at each decoder layer's input
    packed = [_pack_enc(w, b, p) for (w, b), p in zip(torch_enc, enc_p)]
    packed += [_pack_dec(w, b, p) for (w, b), p in zip(torch_dec, dec_p)]
    return torch_enc, torch_dec, packed


def reference_forward(x_ncl, torch_enc, torch_dec):
    """Pure-XLA reference with exact PyTorch conv semantics."""
    h = x_ncl
    for w, b in torch_enc:
        h = jax.lax.conv_general_dilated(
            h, w, window_strides=(2,), padding=[(1, 1)],
            dimension_numbers=("NCH", "OIH", "NCH"),
            precision=jax.lax.Precision.HIGHEST) + b[None, :, None]
        h = jnp.maximum(h, 0.0)
    for i, (w, b) in enumerate(torch_dec):
        wf = jnp.flip(jnp.transpose(w, (1, 0, 2)), axis=2)   # (Cout, Cin, K)
        h = jax.lax.conv_general_dilated(
            h, wf, window_strides=(1,), padding=[(1, 2)], lhs_dilation=(2,),
            dimension_numbers=("NCH", "OIH", "NCH"),
            precision=jax.lax.Precision.HIGHEST) + b[None, :, None]
        h = jnp.maximum(h, 0.0) if i < 2 else jnp.tanh(h)
    return h


# ----------------------------------- main ------------------------------------

if __name__ == "__main__":
    batch, input_dim, latent_dim = 2, 64, 8
    key = jax.random.PRNGKey(0)
    k_x, k_p = jax.random.split(key)

    x = jax.random.normal(k_x, (batch, 1, input_dim), jnp.float32)   # NCL like PyTorch
    torch_enc, torch_dec, packed_weights = init_params(k_p, latent_dim)

    y = cae_forward(x, packed_weights)
    y = jax.block_until_ready(y)

    y_ref = reference_forward(x, torch_enc, torch_dec)
    np.testing.assert_allclose(np.asarray(y), np.asarray(y_ref), rtol=2e-4, atol=2e-4)
    print("KERNEL_OK")
</pallas_src>

<mosaic_0001>
module attributes {stable_mosaic.version = 11 : i64} {
  func.func @_cae_kernel(%arg0: i32, %arg1: memref<16x8xf32, #tpu.memory_space<vmem>>, %arg2: memref<10x64xf32, #tpu.memory_space<vmem>>, %arg3: memref<81x64xf32, #tpu.memory_space<vmem>>, %arg4: memref<97x8xf32, #tpu.memory_space<vmem>>, %arg5: memref<17x64xf32, #tpu.memory_space<vmem>>, %arg6: memref<97x64xf32, #tpu.memory_space<vmem>>, %arg7: memref<81x8xf32, #tpu.memory_space<vmem>>, %arg8: memref<16x8xf32, #tpu.memory_space<vmem>>) attributes {dimension_semantics = [#tpu.dimension_semantics<parallel>], iteration_bounds = array<i64: 1>, scalar_prefetch = 0 : i64, scratch_operands = 0 : i64, tpu.core_type = #tpu.core_type<tc>, window_params = [{transform_indices = @transform_0, window_bounds = array<i64: 16, 8>}, {pipeline_mode = #tpu.pipeline_mode<synchronous>, transform_indices = @transform_1, window_bounds = array<i64: 10, 64>}, {pipeline_mode = #tpu.pipeline_mode<synchronous>, transform_indices = @transform_2, window_bounds = array<i64: 81, 64>}, {pipeline_mode = #tpu.pipeline_mode<synchronous>, transform_indices = @transform_3, window_bounds = array<i64: 97, 8>}, {pipeline_mode = #tpu.pipeline_mode<synchronous>, transform_indices = @transform_4, window_bounds = array<i64: 17, 64>}, {pipeline_mode = #tpu.pipeline_mode<synchronous>, transform_indices = @transform_5, window_bounds = array<i64: 97, 64>}, {pipeline_mode = #tpu.pipeline_mode<synchronous>, transform_indices = @transform_6, window_bounds = array<i64: 81, 8>}, {transform_indices = @transform_7, window_bounds = array<i64: 16, 8>}]} {
    %0 = tpu.iota {dimensions = array<i32: 0>} : vector<16x1xi32>
    %c8_i32 = arith.constant 8 : i32
    %c0_i32 = arith.constant 0 : i32
    %1 = arith.cmpi eq, %c8_i32, %c0_i32 : i32
    %c1_i32 = arith.constant 1 : i32
    %2 = arith.select %1, %c1_i32, %c8_i32 : i32
    %3 = vector.broadcast %2 : i32 to vector<16x1xi32>
    %4 = arith.remsi %0, %3 : vector<16x1xi32>
    %c0_i32_0 = arith.constant 0 : i32
    %5 = vector.broadcast %c0_i32_0 : i32 to vector<16x1xi32>
    %6 = arith.cmpi ne, %4, %5 : vector<16x1xi32>
    %c0_i32_1 = arith.constant 0 : i32
    %7 = vector.broadcast %c0_i32_1 : i32 to vector<16x1xi32>
    %8 = arith.cmpi slt, %4, %7 : vector<16x1xi32>
    %c0_i32_2 = arith.constant 0 : i32
    %9 = arith.cmpi slt, %2, %c0_i32_2 : i32
    %10 = vector.broadcast %9 : i1 to vector<16x1xi1>
    %11 = vector.broadcast %10 : vector<16x1xi1> to vector<16x1xi1>
    %12 = arith.xori %8, %11 : vector<16x1xi1>
    %13 = arith.andi %12, %6 : vector<16x1xi1>
    %14 = vector.broadcast %2 : i32 to vector<16x1xi32>
    %15 = arith.addi %4, %14 : vector<16x1xi32>
    %16 = arith.select %13, %15, %4 : vector<16x1xi1>, vector<16x1xi32>
    %c0_i32_3 = arith.constant 0 : i32
    %17 = vector.broadcast %c0_i32_3 : i32 to vector<16x1xi32>
    %18 = arith.cmpi ne, %16, %17 : vector<16x1xi32>
    %19 = arith.extui %18 : vector<16x1xi1> to vector<16x1xi32>
    %20 = arith.sitofp %19 : vector<16x1xi32> to vector<16x1xf32>
    %c8_i32_4 = arith.constant 8 : i32
    %c0_i32_5 = arith.constant 0 : i32
    %21 = arith.cmpi eq, %c8_i32_4, %c0_i32_5 : i32
    %c1_i32_6 = arith.constant 1 : i32
    %22 = arith.select %21, %c1_i32_6, %c8_i32_4 : i32
    %23 = vector.broadcast %22 : i32 to vector<16x1xi32>
    %24 = arith.remsi %0, %23 : vector<16x1xi32>
    %c0_i32_7 = arith.constant 0 : i32
    %25 = vector.broadcast %c0_i32_7 : i32 to vector<16x1xi32>
    %26 = arith.cmpi ne, %24, %25 : vector<16x1xi32>
    %c0_i32_8 = arith.constant 0 : i32
    %27 = vector.broadcast %c0_i32_8 : i32 to vector<16x1xi32>
    %28 = arith.cmpi slt, %24, %27 : vector<16x1xi32>
    %c0_i32_9 = arith.constant 0 : i32
    %29 = arith.cmpi slt, %22, %c0_i32_9 : i32
    %30 = vector.broadcast %29 : i1 to vector<16x1xi1>
    %31 = vector.broadcast %30 : vector<16x1xi1> to vector<16x1xi1>
    %32 = arith.xori %28, %31 : vector<16x1xi1>
    %33 = arith.andi %32, %26 : vector<16x1xi1>
    %34 = vector.broadcast %22 : i32 to vector<16x1xi32>
    %35 = arith.addi %24, %34 : vector<16x1xi32>
    %36 = arith.select %33, %35, %24 : vector<16x1xi1>, vector<16x1xi32>
    %c7_i32 = arith.constant 7 : i32
    %37 = vector.broadcast %c7_i32 : i32 to vector<16x1xi32>
    %38 = arith.cmpi ne, %36, %37 : vector<16x1xi32>
    %39 = arith.extui %38 : vector<16x1xi1> to vector<16x1xi32>
    %40 = arith.sitofp %39 : vector<16x1xi32> to vector<16x1xf32>
    %c0 = arith.constant 0 : index
    %c0_10 = arith.constant 0 : index
    %41 = vector.load %arg1[%c0, %c0_10] : memref<16x8xf32, #tpu.memory_space<vmem>>, vector<16x8xf32>
    %c0_11 = arith.constant 0 : index
    %c0_12 = arith.constant 0 : index
    %42 = vector.load %arg2[%c0_11, %c0_12] : memref<10x64xf32, #tpu.memory_space<vmem>>, vector<1x64xf32>
    %c1 = arith.constant 1 : index
    %c0_13 = arith.constant 0 : index
    %43 = vector.load %arg2[%c1, %c0_13] : memref<10x64xf32, #tpu.memory_space<vmem>>, vector<8x64xf32>
    %c9 = arith.constant 9 : index
    %c0_14 = arith.constant 0 : index
    %44 = vector.load %arg2[%c9, %c0_14] : memref<10x64xf32, #tpu.memory_space<vmem>>, vector<1x64xf32>
    %45 = vector.extract_strided_slice %41 {offsets = [0, 7], sizes = [16, 1], strides = [1, 1]} : vector<16x8xf32> to vector<16x1xf32>
    %cst = arith.constant 0.000000e+00 : f32
    %46 = vector.broadcast %cst : f32 to vector<1x1xf32>
    %47 = vector.extract_strided_slice %45 {offsets = [0, 0], sizes = [15, 1], strides = [1, 1]} : vector<16x1xf32> to vector<15x1xf32>
    %48 = tpu.concatenate %46, %47 in 0 : vector<1x1xf32>, vector<15x1xf32> -> vector<16x1xf32>
    %49 = arith.mulf %48, %20 : vector<16x1xf32>
    %cst_15 = arith.constant dense<0.000000e+00> : vector<16x64xf32>
    %50 = tpu.matmul %41, %43, %cst_15 {dimension_numbers = #tpu.dot_dimension_numbers<[1], [0], [0], [1], [0, 0, 1, 1], [], []>} : vector<16x8xf32>, vector<8x64xf32>, vector<16x64xf32> -> vector<16x64xf32>
    %51 = vector.broadcast %49 : vector<16x1xf32> to vector<16x64xf32>
    %52 = vector.broadcast %42 : vector<1x64xf32> to vector<16x64xf32>
    %53 = arith.mulf %51, %52 : vector<16x64xf32>
    %54 = arith.addf %50, %53 : vector<16x64xf32>
    %55 = vector.broadcast %44 : vector<1x64xf32> to vector<16x64xf32>
    %56 = arith.addf %54, %55 : vector<16x64xf32>
    %cst_16 = arith.constant 0.000000e+00 : f32
    %57 = vector.broadcast %cst_16 : f32 to vector<16x64xf32>
    %58 = arith.maximumf %56, %57 : vector<16x64xf32>
    %c0_17 = arith.constant 0 : index
    %c0_18 = arith.constant 0 : index
    %59 = vector.load %arg3[%c0_17, %c0_18] : memref<81x64xf32, #tpu.memory_space<vmem>>, vector<16x64xf32>
    %c16 = arith.constant 16 : index
    %c0_19 = arith.constant 0 : index
    %60 = vector.load %arg3[%c16, %c0_19] : memref<81x64xf32, #tpu.memory_space<vmem>>, vector<64x64xf32>
    %c80 = arith.constant 80 : index
    %c0_20 = arith.constant 0 : index
    %61 = vector.load %arg3[%c80, %c0_20] : memref<81x64xf32, #tpu.memory_space<vmem>>, vector<1x64xf32>
    %62 = vector.extract_strided_slice %58 {offsets = [0, 48], sizes = [16, 16], strides = [1, 1]} : vector<16x64xf32> to vector<16x16xf32>
    %cst_21 = arith.constant 0.000000e+00 : f32
    %63 = vector.broadcast %cst_21 : f32 to vector<1x16xf32>
    %64 = vector.extract_strided_slice %62 {offsets = [0, 0], sizes = [15, 16], strides = [1, 1]} : vector<16x16xf32> to vector<15x16xf32>
    %65 = tpu.concatenate %63, %64 in 0 : vector<1x16xf32>, vector<15x16xf32> -> vector<16x16xf32>
    %66 = vector.broadcast %20 : vector<16x1xf32> to vector<16x16xf32>
    %67 = arith.mulf %65, %66 : vector<16x16xf32>
    %cst_22 = arith.constant dense<0.000000e+00> : vector<16x64xf32>
    %68 = tpu.matmul %58, %60, %cst_22 {dimension_numbers = #tpu.dot_dimension_numbers<[1], [0], [0], [1], [0, 0, 1, 1], [], []>} : vector<16x64xf32>, vector<64x64xf32>, vector<16x64xf32> -> vector<16x64xf32>
    %cst_23 = arith.constant dense<0.000000e+00> : vector<16x64xf32>
    %69 = tpu.matmul %67, %59, %cst_23 {dimension_numbers = #tpu.dot_dimension_numbers<[1], [0], [0], [1], [0, 0, 1, 1], [], []>} : vector<16x16xf32>, vector<16x64xf32>, vector<16x64xf32> -> vector<16x64xf32>
    %70 = arith.addf %68, %69 : vector<16x64xf32>
    %71 = vector.broadcast %61 : vector<1x64xf32> to vector<16x64xf32>
    %72 = arith.addf %70, %71 : vector<16x64xf32>
    %cst_24 = arith.constant 0.000000e+00 : f32
    %73 = vector.broadcast %cst_24 : f32 to vector<16x64xf32>
    %74 = arith.maximumf %72, %73 : vector<16x64xf32>
    %c0_25 = arith.constant 0 : index
    %c0_26 = arith.constant 0 : index
    %75 = vector.load %arg4[%c0_25, %c0_26] : memref<97x8xf32, #tpu.memory_space<vmem>>, vector<32x8xf32>
    %c32 = arith.constant 32 : index
    %c0_27 = arith.constant 0 : index
    %76 = vector.load %arg4[%c32, %c0_27] : memref<97x8xf32, #tpu.memory_space<vmem>>, vector<64x8xf32>
    %c96 = arith.constant 96 : index
    %c0_28 = arith.constant 0 : index
    %77 = vector.load %arg4[%c96, %c0_28] : memref<97x8xf32, #tpu.memory_space<vmem>>, vector<1x8xf32>
    %78 = vector.extract_strided_slice %74 {offsets = [0, 32], sizes = [16, 32], strides = [1, 1]} : vector<16x64xf32> to vector<16x32xf32>
    %cst_29 = arith.constant 0.000000e+00 : f32
    %79 = vector.broadcast %cst_29 : f32 to vector<1x32xf32>
    %80 = vector.extract_strided_slice %78 {offsets = [0, 0], sizes = [15, 32], strides = [1, 1]} : vector<16x32xf32> to vector<15x32xf32>
    %81 = tpu.concatenate %79, %80 in 0 : vector<1x32xf32>, vector<15x32xf32> -> vector<16x32xf32>
    %82 = vector.broadcast %20 : vector<16x1xf32> to vector<16x32xf32>
    %83 = arith.mulf %81, %82 : vector<16x32xf32>
    %cst_30 = arith.constant dense<0.000000e+00> : vector<16x8xf32>
    %84 = tpu.matmul %74, %76, %cst_30 {dimension_numbers = #tpu.dot_dimension_numbers<[1], [0], [0], [1], [0, 0, 1, 1], [], []>} : vector<16x64xf32>, vector<64x8xf32>, vector<16x8xf32> -> vector<16x8xf32>
    %cst_31 = arith.constant dense<0.000000e+00> : vector<16x8xf32>
    %85 = tpu.matmul %83, %75, %cst_31 {dimension_numbers = #tpu.dot_dimension_numbers<[1], [0], [0], [1], [0, 0, 1, 1], [], []>} : vector<16x32xf32>, vector<32x8xf32>, vector<16x8xf32> -> vector<16x8xf32>
    %86 = arith.addf %84, %85 : vector<16x8xf32>
    %87 = vector.broadcast %77 : vector<1x8xf32> to vector<16x8xf32>
    %88 = arith.addf %86, %87 : vector<16x8xf32>
    %cst_32 = arith.constant 0.000000e+00 : f32
    %89 = vector.broadcast %cst_32 : f32 to vector<16x8xf32>
    %90 = arith.maximumf %88, %89 : vector<16x8xf32>
    %c0_33 = arith.constant 0 : index
    %c0_34 = arith.constant 0 : index
    %91 = vector.load %arg5[%c0_33, %c0_34] : memref<17x64xf32, #tpu.memory_space<vmem>>, vector<8x64xf32>
    %c8 = arith.constant 8 : index
    %c0_35 = arith.constant 0 : index
    %92 = vector.load %arg5[%c8, %c0_35] : memref<17x64xf32, #tpu.memory_space<vmem>>, vector<8x64xf32>
    %c16_36 = arith.constant 16 : index
    %c0_37 = arith.constant 0 : index
    %93 = vector.load %arg5[%c16_36, %c0_37] : memref<17x64xf32, #tpu.memory_space<vmem>>, vector<1x64xf32>
    %94 = vector.extract_strided_slice %90 {offsets = [1, 0], sizes = [15, 8], strides = [1, 1]} : vector<16x8xf32> to vector<15x8xf32>
    %cst_38 = arith.constant 0.000000e+00 : f32
    %95 = vector.broadcast %cst_38 : f32 to vector<1x8xf32>
    %96 = tpu.concatenate %94, %95 in 0 : vector<15x8xf32>, vector<1x8xf32> -> vector<16x8xf32>
    %97 = vector.broadcast %40 : vector<16x1xf32> to vector<16x8xf32>
    %98 = arith.mulf %96, %97 : vector<16x8xf32>
    %cst_39 = arith.constant dense<0.000000e+00> : vector<16x64xf32>
    %99 = tpu.matmul %90, %91, %cst_39 {dimension_numbers = #tpu.dot_dimension_numbers<[1], [0], [0], [1], [0, 0, 1, 1], [], []>} : vector<16x8xf32>, vector<8x64xf32>, vector<16x64xf32> -> vector<16x64xf32>
    %cst_40 = arith.constant dense<0.000000e+00> : vector<16x64xf32>
    %100 = tpu.matmul %98, %92, %cst_40 {dimension_numbers = #tpu.dot_dimension_numbers<[1], [0], [0], [1], [0, 0, 1, 1], [], []>} : vector<16x8xf32>, vector<8x64xf32>, vector<16x64xf32> -> vector<16x64xf32>
    %101 = arith.addf %99, %100 : vector<16x64xf32>
    %102 = vector.broadcast %93 : vector<1x64xf32> to vector<16x64xf32>
    %103 = arith.addf %101, %102 : vector<16x64xf32>
    %cst_41 = arith.constant 0.000000e+00 : f32
    %104 = vector.broadcast %cst_41 : f32 to vector<16x64xf32>
    %105 = arith.maximumf %103, %104 : vector<16x64xf32>
    %c0_42 = arith.constant 0 : index
    %c0_43 = arith.constant 0 : index
    %106 = vector.load %arg6[%c0_42, %c0_43] : memref<97x64xf32, #tpu.memory_space<vmem>>, vector<64x64xf32>
    %c64 = arith.constant 64 : index
    %c0_44 = arith.constant 0 : index
    %107 = vector.load %arg6[%c64, %c0_44] : memref<97x64xf32, #tpu.memory_space<vmem>>, vector<32x64xf32>
    %c96_45 = arith.constant 96 : index
    %c0_46 = arith.constant 0 : index
    %108 = vector.load %arg6[%c96_45, %c0_46] : memref<97x64xf32, #tpu.memory_space<vmem>>, vector<1x64xf32>
    %109 = vector.extract_strided_slice %105 {offsets = [0, 0], sizes = [16, 32], strides = [1, 1]} : vector<16x64xf32> to vector<16x32xf32>
    %110 = vector.extract_strided_slice %109 {offsets = [1, 0], sizes = [15, 32], strides = [1, 1]} : vector<16x32xf32> to vector<15x32xf32>
    %cst_47 = arith.constant 0.000000e+00 : f32
    %111 = vector.broadcast %cst_47 : f32 to vector<1x32xf32>
    %112 = tpu.concatenate %110, %111 in 0 : vector<15x32xf32>, vector<1x32xf32> -> vector<16x32xf32>
    %113 = vector.broadcast %40 : vector<16x1xf32> to vector<16x32xf32>
    %114 = arith.mulf %112, %113 : vector<16x32xf32>
    %cst_48 = arith.constant dense<0.000000e+00> : vector<16x64xf32>
    %115 = tpu.matmul %105, %106, %cst_48 {dimension_numbers = #tpu.dot_dimension_numbers<[1], [0], [0], [1], [0, 0, 1, 1], [], []>} : vector<16x64xf32>, vector<64x64xf32>, vector<16x64xf32> -> vector<16x64xf32>
    %cst_49 = arith.constant dense<0.000000e+00> : vector<16x64xf32>
    %116 = tpu.matmul %114, %107, %cst_49 {dimension_numbers = #tpu.dot_dimension_numbers<[1], [0], [0], [1], [0, 0, 1, 1], [], []>} : vector<16x32xf32>, vector<32x64xf32>, vector<16x64xf32> -> vector<16x64xf32>
    %117 = arith.addf %115, %116 : vector<16x64xf32>
    %118 = vector.broadcast %108 : vector<1x64xf32> to vector<16x64xf32>
    %119 = arith.addf %117, %118 : vector<16x64xf32>
    %cst_50 = arith.constant 0.000000e+00 : f32
    %120 = vector.broadcast %cst_50 : f32 to vector<16x64xf32>
    %121 = arith.maximumf %119, %120 : vector<16x64xf32>
    %c0_51 = arith.constant 0 : index
    %c0_52 = arith.constant 0 : index
    %122 = vector.load %arg7[%c0_51, %c0_52] : memref<81x8xf32, #tpu.memory_space<vmem>>, vector<64x8xf32>
    %c64_53 = arith.constant 64 : index
    %c0_54 = arith.constant 0 : index
    %123 = vector.load %arg7[%c64_53, %c0_54] : memref<81x8xf32, #tpu.memory_space<vmem>>, vector<16x8xf32>
    %c80_55 = arith.constant 80 : index
    %c0_56 = arith.constant 0 : index
    %124 = vector.load %arg7[%c80_55, %c0_56] : memref<81x8xf32, #tpu.memory_space<vmem>>, vector<1x8xf32>
    %125 = vector.extract_strided_slice %121 {offsets = [0, 0], sizes = [16, 16], strides = [1, 1]} : vector<16x64xf32> to vector<16x16xf32>
    %126 = vector.extract_strided_slice %125 {offsets = [1, 0], sizes = [15, 16], strides = [1, 1]} : vector<16x16xf32> to vector<15x16xf32>
    %cst_57 = arith.constant 0.000000e+00 : f32
    %127 = vector.broadcast %cst_57 : f32 to vector<1x16xf32>
    %128 = tpu.concatenate %126, %127 in 0 : vector<15x16xf32>, vector<1x16xf32> -> vector<16x16xf32>
    %129 = vector.broadcast %40 : vector<16x1xf32> to vector<16x16xf32>
    %130 = arith.mulf %128, %129 : vector<16x16xf32>
    %cst_58 = arith.constant dense<0.000000e+00> : vector<16x8xf32>
    %131 = tpu.matmul %121, %122, %cst_58 {dimension_numbers = #tpu.dot_dimension_numbers<[1], [0], [0], [1], [0, 0, 1, 1], [], []>} : vector<16x64xf32>, vector<64x8xf32>, vector<16x8xf32> -> vector<16x8xf32>
    %cst_59 = arith.constant dense<0.000000e+00> : vector<16x8xf32>
    %132 = tpu.matmul %130, %123, %cst_59 {dimension_numbers = #tpu.dot_dimension_numbers<[1], [0], [0], [1], [0, 0, 1, 1], [], []>} : vector<16x16xf32>, vector<16x8xf32>, vector<16x8xf32> -> vector<16x8xf32>
    %133 = arith.addf %131, %132 : vector<16x8xf32>
    %134 = vector.broadcast %124 : vector<1x8xf32> to vector<16x8xf32>
    %135 = arith.addf %133, %134 : vector<16x8xf32>
    %136 = math.tanh %135 : vector<16x8xf32>
    %c0_60 = arith.constant 0 : index
    %c0_61 = arith.constant 0 : index
    %137 = vector.load %arg8[%c0_60, %c0_61] : memref<16x8xf32, #tpu.memory_space<vmem>>, vector<16x8xf32>
    tpu.vector_store %arg8[%c0_60, %c0_61], %136 {strides = array<i32>} : memref<16x8xf32, #tpu.memory_space<vmem>>, vector<16x8xf32>,
    return
  }
  func.func @transform_0(%arg0: i32) -> (i32, i32) {
    %c0_i32 = arith.constant 0 : i32
    %c0_i32_0 = arith.constant 0 : i32
    return %arg0, %c0_i32 : i32, i32
  }
  func.func @transform_1(%arg0: i32) -> (i32, i32) {
    %c0_i32 = arith.constant 0 : i32
    %c0_i32_0 = arith.constant 0 : i32
    %c0_i32_1 = arith.constant 0 : i32
    return %c0_i32, %c0_i32_0 : i32, i32
  }
  func.func @transform_2(%arg0: i32) -> (i32, i32) {
    %c0_i32 = arith.constant 0 : i32
    %c0_i32_0 = arith.constant 0 : i32
    %c0_i32_1 = arith.constant 0 : i32
    return %c0_i32, %c0_i32_0 : i32, i32
  }
  func.func @transform_3(%arg0: i32) -> (i32, i32) {
    %c0_i32 = arith.constant 0 : i32
    %c0_i32_0 = arith.constant 0 : i32
    %c0_i32_1 = arith.constant 0 : i32
    return %c0_i32, %c0_i32_0 : i32, i32
  }
  func.func @transform_4(%arg0: i32) -> (i32, i32) {
    %c0_i32 = arith.constant 0 : i32
    %c0_i32_0 = arith.constant 0 : i32
    %c0_i32_1 = arith.constant 0 : i32
    return %c0_i32, %c0_i32_0 : i32, i32
  }
  func.func @transform_5(%arg0: i32) -> (i32, i32) {
    %c0_i32 = arith.constant 0 : i32
    %c0_i32_0 = arith.constant 0 : i32
    %c0_i32_1 = arith.constant 0 : i32
    return %c0_i32, %c0_i32_0 : i32, i32
  }
  func.func @transform_6(%arg0: i32) -> (i32, i32) {
    %c0_i32 = arith.constant 0 : i32
    %c0_i32_0 = arith.constant 0 : i32
    %c0_i32_1 = arith.constant 0 : i32
    return %c0_i32, %c0_i32_0 : i32, i32
  }
  func.func @transform_7(%arg0: i32) -> (i32, i32) {
    %c0_i32 = arith.constant 0 : i32
    %c0_i32_0 = arith.constant 0 : i32
    return %arg0, %c0_i32 : i32, i32
  }
}

</mosaic_0001>

<bundles_post_ra>
// kernel: tpu_custom_call.1
= control target key start
LH: loop header
LB: loop body
LE: loop exit
PB: predicated region body
PF: predicated region fallthrough
CT: control target
= control target key end

     0   :  { %vm101_vm0 = vcmask 64512   ;;  %v1486_v3 = vmov 0   ;;  %vm72_vm1 = vcmask 1040384   ;;  %s1487_s30 = smov 121   ;;  %v26_v7 = vlaneseq  ;;  %s1489_s19 = smov 80   ;;  %s1780_s0 = inlined_call_operand.vmem [shape: f32[16,8], index: 0, kind: input, shape index: {}]   ;;  %s1781_s1 = inlined_call_operand.vmem [shape: f32[10,64], index: 1, kind: input, shape index: {}]   ;;  %s1782_s2 = inlined_call_operand.vmem [shape: f32[81,64], index: 2, kind: input, shape index: {}]   ;;  %s1783_s3 = inlined_call_operand.vmem [shape: f32[97,8], index: 3, kind: input, shape index: {}]   ;;  %s1784_s4 = inlined_call_operand.vmem [shape: f32[17,64], index: 4, kind: input, shape index: {}]   ;;  %s1785_s5 = inlined_call_operand.vmem [shape: f32[97,64], index: 5, kind: input, shape index: {}]   ;;  %s1786_s6 = inlined_call_operand.vmem [shape: f32[81,8], index: 6, kind: input, shape index: {}]   ;;  %s1787_s7 = inlined_call_operand.vmem [shape: f32[16,8], index: 7, kind: output, shape index: {}]  }
   0x1   :  { %v65_v0 = vld [vmem:[%s1780_s0] sm:$0xff]  ;;  %v66_v1 = vld [vmem:[%s1780_s0 + $0x8] sm:$0xff]  ;;  %1480 = vset.pattern.permute.xlu1 %v1486_v3  ;;  %1481 = vset.pattern.permute.xlu0 %v1486_v3  ;;  %v1488_v12 = vmov 0.0   ;;  %v191_v28 = vld [vmem:[%s1782_s2 + $0x10] sm:$0xff]  ;;  %vm214_vm4 = vcmask 130048   ;;  %vm296_vm5 = vcmask 523264  }
   0x2   :  { %v68_v2 = vld [vmem:[%s1781_s1 + $0x1] sm:$0xff]  ;;  %v73_v4 = vrot.slane %v65_v0, 7  ;;  %v74_v5 = vrot.slane %v66_v1, 7  ;;  %1252 = vmatprep.mubr.msk.f32.mxu0 %vm101_vm0, %v65_v0  ;;  %v1543_v8 = vshrl.u32 %v26_v7, 7  ;;  %v1152_v24 = vld [vmem:[%s1781_s1] ss:$0 sm:$0xff] }
   0x3   :  { %1250 = vmatprep.subr.mxu0 %v68_v2  ;;  %v189_v22 = vld [vmem:[%s1782_s2] sm:$0xff]  ;;  %v190_v23 = vld [vmem:[%s1782_s2 + $0x8] sm:$0xff]  ;;  %v192_v29 = vld [vmem:[%s1782_s2 + $0x18] sm:$0xff]  ;;  %s1490_s20 = smov 96   ;;  %vm411_vm6 = vcmask 261120   ;;  %vm585_vm9 = vcmask 1046528  }
   0x4   :  { %1251 = vmatpush3.msra.mxu0 %v68_v2  ;;  %76 = vrot.lane.b32.xlu0 %v73_v4, %s1487_s30  ;;  %v75_v6 = vsel %vm72_vm1, %v73_v4, %v74_v5  ;;  %v1546_v9 = vadd.s32 8, %v1543_v8  ;;  %v33_v10 = vand.u32 7, %v1543_v8  ;;  %v1377_v25 = vpack.c.bf16 %v190_v23, %v189_v22  ;;  %v1155_v30 = vld [vmem:[%s1781_s1 + $0x9] ss:$0 sm:$0xff]  ;;  %v193_v46 = vld [vmem:[%s1782_s2 + $0x20] sm:$0xff]  ;;  %v195_v51 = vld [vmem:[%s1782_s2 + $0x30] sm:$0xff] }
   0x5   :  { %1253 = vmatmul.mubr.msk.f32.vlgmr.msra.gmra.mrb[0].mxu0 %vm101_vm0, %v66_v1  ;;  %v1381_v31 = vpack.c.bf16 %v192_v29, %v191_v28  ;;  %v194_v47 = vld [vmem:[%s1782_s2 + $0x28] sm:$0xff]  ;;  %v196_v52 = vld [vmem:[%s1782_s2 + $0x38] sm:$0xff]  ;;  %v197_v54 = vld [vmem:[%s1782_s2 + $0x40] sm:$0xff] }
   0x6   :  { %v40_v11 = vand.u32 7, %v1546_v9  ;;  %vm53_vm2 = vcmp.ne.s32.totalorder %v33_v10, 0  ;;  %1378 = vmatprep.subr.bf16.mxu1 %v1377_v25  ;;  %v1385_v50 = vpack.c.bf16 %v194_v47, %v193_v46  ;;  %v1389_v53 = vpack.c.bf16 %v196_v52, %v195_v51  ;;  %v198_v55 = vld [vmem:[%s1782_s2 + $0x48] sm:$0xff]  ;;  %v384_v57 = vld [vmem:[%s1783_s3] sm:$0xff]  ;;  %v386_v59 = vld [vmem:[%s1783_s3 + $0x10] sm:$0xff] }
   0x7   :  { %v1553_v13 = vsel %vm53_vm2, 1.0, %v1488_v12  ;;  %1380 = vmatpush3.bf16.msra.mxu1 %v1377_v25  ;;  %v1393_v56 = vpack.c.bf16 %v198_v55, %v197_v54  ;;  %v385_v58 = vld [vmem:[%s1783_s3 + $0x8] sm:$0xff]  ;;  %v387_v61 = vld [vmem:[%s1783_s3 + $0x18] sm:$0xff]  ;;  %v388_v63 = vld [vmem:[%s1783_s3 + $0x20] sm:$0xff]  ;;  %vm59_vm7 = vcmp.ne.s32.totalorder %v33_v10, 7 }
   0x8   :  { %78 = vrot.lane.b32.xlu0 %v75_v6, %s1487_s30  ;;  %vm54_vm3 = vcmp.ne.s32.totalorder %v40_v11, 0  ;;  %1382 = vmatprep.subr.bf16.mxu1 %v1381_v31  ;;  %v1397_v60 = vpack.c.bf16 %v385_v58, %v384_v57  ;;  %v1401_v62 = vpack.c.bf16 %v387_v61, %v386_v59  ;;  %v389_v0 = vld [vmem:[%s1783_s3 + $0x28] sm:$0xff]  ;;  %v1160_v2 = vld [vmem:[%s1782_s2 + $0x50] ss:$0 sm:$0xff]  ;;  %v395_v29 = vld [vmem:[%s1783_s3 + $0x58] sm:$0xff]  ;;  %vm60_vm8 = vcmp.ne.s32.totalorder %v40_v11, 7 }
   0x9   :  { %v1560_v17 = vsel %vm54_vm3, 1.0, %v1488_v12  ;;  %v1405_v1 = vpack.c.bf16 %v389_v0, %v388_v63  ;;  %v393_v28 = vld [vmem:[%s1783_s3 + $0x48] sm:$0xff]  ;;  %v770_v9 = vld [vmem:[%s1785_s5 + $0x40] sm:$0xff]  ;;  %v772_v46 = vld [vmem:[%s1785_s5 + $0x50] sm:$0xff] }
   0xa   :  { %1398 = vmatprep.subr.bf16.mxu0 %v1397_v60  ;;  %v771_v11 = vld [vmem:[%s1785_s5 + $0x48] sm:$0xff]  ;;  %v773_v47 = vld [vmem:[%s1785_s5 + $0x58] sm:$0xff]  ;;  %v1170_v52 = vld [vmem:[%s1784_s4 + $0x10] ss:$0 sm:$0xff] }
   0xb   :  { %1400 = vmatpush3.bf16.msra.mxu0 %v1397_v60  ;;  %v765_v63 = vld [vmem:[%s1785_s5 + $0x18] sm:$0xff] }
   0xc   :  { %1402 = vmatprep.subr.bf16.mxu0 %v1401_v62 }
   0xf   :  { %1404 = vmatpush3.bf16.msra.mxu0 %v1401_v62  ;;  %v764_v62 = vld [vmem:[%s1785_s5 + $0x10] sm:$0xff] }
  0x10   :  { %1406 = vmatprep.subr.bf16.mxu0 %v1405_v1 }
  0x76   :  { %v77_v14 = vpop.permute.xlu0 %76 }
  0x77   :  { %v82_v15 = vsel %vm72_vm1, 0.0, %v77_v14 }
  0x78   :  { %v83_v16 = vmul.f32 %v1553_v13, %v82_v15 }
  0x7a   :  { %87 = vperm.xlu1 %1480, %v83_v16   ;;  %v79_v18 = vpop.permute.xlu0 %78 }
  0x7b   :  { %v84_v19 = vmul.f32 %v1560_v17, %v79_v18 }
  0x7e   :  { %92 = vperm.xlu1 %1480, %v84_v19  }
  0xd8   :  { %v1254_v20 = vpop.f32.mrb[0].mxu0 }
  0xd9   :  { %v172_v21 = vpop.f32.mrb[1].mxu0 }
  0xf9   :  { %v88_v26 = vpop.permute.xlu1 %87 }
  0xfa   :  { %v99_v27 = vmul.f32 %v1152_v24, %v88_v26 }
  0xfc   :  { %v173_v32 = vadd.f32 %v172_v21, %v99_v27  ;;  %v391_v21 = vld [vmem:[%s1783_s3 + $0x38] sm:$0xff]  ;;  %v392_v27 = vld [vmem:[%s1783_s3 + $0x40] sm:$0xff] }
  0xfd   :  { %v93_v33 = vpop.permute.xlu1 %92 }
  0xfe   :  { %v185_v34 = vadd.f32 %v1155_v30, %v173_v32  ;;  %v100_v35 = vmul.f32 %v1152_v24, %v93_v33  ;;  %v580_v32 = vld [vmem:[%s1784_s4] sm:$0xff] }
  0xff   :  { %v1165_v33 = vld [vmem:[%s1783_s3 + $0x60] ss:$0 sm:$0xff] }
 0x100   :  { %v187_v36 = vmax.f32 %v185_v34, 0.0  ;;  %v178_v37 = vadd.f32 %v1254_v20, %v100_v35  ;;  %v390_v20 = vld [vmem:[%s1783_s3 + $0x30] sm:$0xff] }
 0x101   :  { %v1409_v26 = vpack.c.bf16 %v391_v21, %v390_v20  ;;  %v953_v20 = vld [vmem:[%s1786_s6] sm:$0xff]  ;;  %v954_v21 = vld [vmem:[%s1786_s6 + $0x8] sm:$0xff] }
 0x102   :  { %v186_v38 = vadd.f32 %v1155_v30, %v178_v37  ;;  %v202_v39 = vrot.slane %v187_v36, 7 }
 0x104   :  { %v188_v40 = vmax.f32 %v186_v38, 0.0  ;;  %205 = vrot.lane.b32.xlu0 %v202_v39, %s1489_s19 }
 0x106   :  { %v203_v41 = vrot.slane %v188_v40, 7 }
 0x108   :  { %v204_v42 = vsel %vm72_vm1, %v202_v39, %v203_v41 }
 0x109   :  { %207 = vrot.lane.b32.xlu1 %v204_v42, %s1489_s19  ;;  %v1668_v42 = vsel %vm59_vm7, 1.0, %v1488_v12 }
 0x176   :  { %v206_v43 = vpop.permute.xlu0 %205 }
 0x177   :  { %v211_v44 = vsel %vm72_vm1, 0.0, %v206_v43  ;;  %v1671_v43 = vsel %vm60_vm8, 1.0, %v1488_v12  ;;  %v1421_v12 = vpack.c.bf16 %v771_v11, %v770_v9 }
 0x178   :  { %v212_v45 = vmul.f32 %v1553_v13, %v211_v44 }
 0x17a   :  { %1259 = vmatprep.mubr.msk.f32.mxu1 %vm214_vm4, %v212_v45 }
 0x17b   :  { %v208_v48 = vpop.permute.xlu1 %207 }
 0x17c   :  { %v213_v49 = vmul.f32 %v1560_v17, %v208_v48  ;;  %v1425_v48 = vpack.c.bf16 %v773_v47, %v772_v46 }
 0x17e   :  { %1260 = vmatmul.mubr.msk.f32.vlgmr.msra.gmra.mrb[0].mxu1 %vm214_vm4, %v213_v49  ;;  %v762_v49 = vld [vmem:[%s1785_s5] sm:$0xff] }
 0x17f   :  { %1384 = vmatpush3.bf16.msra.mxu1 %v1381_v31  ;;  %1278 = vmatprep.mubr.msk.f32.mxu1 %vm296_vm5, %v187_v36  ;;  %v581_v31 = vld [vmem:[%s1784_s4 + $0x8] sm:$0xff] }
 0x180   :  { %1386 = vmatprep.subr.bf16.mxu1 %v1385_v50 }
 0x183   :  { %1388 = vmatpush3.bf16.msra.mxu1 %v1385_v50  ;;  %v763_v50 = vld [vmem:[%s1785_s5 + $0x8] sm:$0xff] }
 0x184   :  { %1390 = vmatprep.subr.bf16.mxu1 %v1389_v53  ;;  %v1429_v51 = vpack.c.bf16 %v763_v50, %v762_v49 }
 0x187   :  { %1392 = vmatpush3.bf16.msra.mxu1 %v1389_v53 }
 0x188   :  { %1394 = vmatprep.subr.bf16.mxu1 %v1393_v56 }
 0x18b   :  { %1396 = vmatpush3.bf16.msra.mxu1 %v1393_v56 }
 0x18c   :  { %1311 = vmatprep.subr.mxu1 %v581_v31 }
 0x18e   :  { %1279 = vmatmul.mubr.msk.f32.vlgmr.msra.gmra.mrb[0].mxu1 %vm296_vm5, %v188_v40 }
 0x18f   :  { %1312 = vmatpush3.msra.mxu1 %v581_v31  ;;  %v955_v31 = vld [vmem:[%s1786_s6 + $0x10] sm:$0xff] }
 0x190   :  { %1316 = vmatprep.subr.mxu1 %v580_v32 }
 0x261   :  { %v1280_v3 = vpop.f32.mrb[0].mxu1 }
 0x262   :  { %v381_v4 = vadd.f32 %v1280_v3, %v1160_v2  ;;  %v367_v5 = vpop.f32.mrb[1].mxu1  ;;  %v1433_v3 = vpack.c.bf16 %v765_v63, %v764_v62 }
 0x263   :  { %v380_v6 = vadd.f32 %v1160_v2, %v367_v5  ;;  %v767_v5 = vld [vmem:[%s1785_s5 + $0x28] sm:$0xff] }
 0x264   :  { %v383_v7 = vmax.f32 %v381_v4, 0.0  ;;  %v766_v4 = vld [vmem:[%s1785_s5 + $0x20] sm:$0xff] }
 0x265   :  { %v382_v14 = vmax.f32 %v380_v6, 0.0  ;;  %v1437_v6 = vpack.c.bf16 %v767_v5, %v766_v4 }
 0x266   :  { %v400_v15 = vrot.slane %v383_v7, 7 }
 0x267   :  { %v399_v16 = vrot.slane %v382_v14, 7 }
 0x269   :  { %402 = vrot.lane.b32.xlu0 %v399_v16, %s1490_s20  ;;  %v401_v18 = vsel %vm72_vm1, %v399_v16, %v400_v15  ;;  %v961_v16 = vld [vmem:[%s1786_s6 + $0x40] sm:$0xff] }
 0x26a   :  { %404 = vrot.lane.b32.xlu1 %v401_v18, %s1490_s20  ;;  %v962_v18 = vld [vmem:[%s1786_s6 + $0x48] sm:$0xff] }
 0x2db   :  { %v403_v19 = vpop.permute.xlu0 %402 }
 0x2dc   :  { %v408_v22 = vsel %vm72_vm1, 0.0, %v403_v19  ;;  %v405_v23 = vpop.permute.xlu1 %404  ;;  %v1445_v19 = vpack.c.bf16 %v962_v18, %v961_v16 }
 0x2dd   :  { %v409_v24 = vmul.f32 %v1553_v13, %v408_v22  ;;  %v410_v25 = vmul.f32 %v1560_v17, %v405_v23  ;;  %v1413_v13 = vpack.c.bf16 %v393_v28, %v392_v27  ;;  %v394_v17 = vld [vmem:[%s1783_s3 + $0x50] sm:$0xff]  ;;  %v1449_v22 = vpack.c.bf16 %v954_v21, %v953_v20  ;;  %v1175_v23 = vld [vmem:[%s1785_s5 + $0x60] ss:$0 sm:$0xff] }
 0x2de   :  { %v1417_v30 = vpack.c.bf16 %v395_v29, %v394_v17 }
 0x2df   :  { %1289 = vmatprep.mubr.msk.f32.mxu0 %vm411_vm6, %v409_v24 }
 0x2e0   :  { %1290 = vmatmul.mubr.msk.f32.vlgmr.msra.gmra.mrb[2].mxu0 %vm411_vm6, %v410_v25 }
 0x2e1   :  { %1408 = vmatpush3.bf16.msra.mxu0 %v1405_v1  ;;  %1308 = vmatprep.mubr.msk.f32.mxu0 %vm296_vm5, %v382_v14  ;;  %v769_v14 = vld [vmem:[%s1785_s5 + $0x38] sm:$0xff] }
 0x2e2   :  { %1410 = vmatprep.subr.bf16.mxu0 %v1409_v26 }
 0x2e5   :  { %1412 = vmatpush3.bf16.msra.mxu0 %v1409_v26 }
 0x2e6   :  { %1414 = vmatprep.subr.bf16.mxu0 %v1413_v13 }
 0x2e9   :  { %1416 = vmatpush3.bf16.msra.mxu0 %v1413_v13 }
 0x2ea   :  { %1418 = vmatprep.subr.bf16.mxu0 %v1417_v30 }
 0x2ed   :  { %1420 = vmatpush3.bf16.msra.mxu0 %v1417_v30 }
 0x2ee   :  { %1422 = vmatprep.subr.bf16.mxu0 %v1421_v12 }
 0x2f0   :  { %1309 = vmatmul.mubr.msk.f32.vlgmr.msra.gmra.mrb[2].mxu0 %vm296_vm5, %v383_v7  ;;  %v768_v7 = vld [vmem:[%s1785_s5 + $0x30] sm:$0xff] }
 0x2f1   :  { %1424 = vmatpush3.bf16.msra.mxu0 %v1421_v12  ;;  %v1441_v15 = vpack.c.bf16 %v769_v14, %v768_v7 }
 0x2f2   :  { %1426 = vmatprep.subr.bf16.mxu0 %v1425_v48 }
 0x2f5   :  { %1428 = vmatpush3.bf16.msra.mxu0 %v1425_v48 }
 0x2f6   :  { %1430 = vmatprep.subr.bf16.mxu0 %v1429_v51 }
 0x3c3   :  { %v1310_v34 = vpop.f32.mrb[2].mxu0 }
 0x3c4   :  { %v577_v35 = vadd.f32 %v1310_v34, %v1165_v33  ;;  %v563_v36 = vpop.f32.mrb[3].mxu0 }
 0x3c5   :  { %v576_v37 = vadd.f32 %v1165_v33, %v563_v36 }
 0x3c6   :  { %v579_v38 = vmax.f32 %v577_v35, 0.0 }
 0x3c7   :  { %v578_v39 = vmax.f32 %v576_v37, 0.0  ;;  %v957_v37 = vld [vmem:[%s1786_s6 + $0x20] sm:$0xff] }
 0x3c8   :  { %v587_v40 = vrot.slane %v579_v38, 1 }
 0x3c9   :  { %v586_v41 = vrot.slane %v578_v39, 1 }
 0x3ca   :  { %v591_v44 = vsel %vm585_vm9, %v587_v40, 0.0 }
 0x3cb   :  { %v588_v45 = vsel %vm585_vm9, %v586_v41, %v587_v40  ;;  %v593_v10 = vmul.f32 %v1671_v43, %v591_v44  ;;  %v959_v40 = vld [vmem:[%s1786_s6 + $0x30] sm:$0xff]  ;;  %v960_v41 = vld [vmem:[%s1786_s6 + $0x38] sm:$0xff] }
 0x3cc   :  { %v592_v8 = vmul.f32 %v1668_v42, %v588_v45 }
 0x3ce   :  { %1313 = vmatprep.mubr.msk.f32.mxu1 %vm101_vm0, %v592_v8 }
 0x3cf   :  { %1314 = vmatmul.mubr.msk.f32.vlgmr.msra.gmra.mrb[2].mxu1 %vm101_vm0, %v593_v10 }
 0x3d0   :  { %1317 = vmatpush3.msra.mxu1 %v580_v32  ;;  %1318 = vmatprep.mubr.msk.f32.mxu1 %vm101_vm0, %v578_v39  ;;  %v956_v32 = vld [vmem:[%s1786_s6 + $0x18] sm:$0xff] }
 0x3d1   :  { %1446 = vmatprep.subr.bf16.mxu1 %v1445_v19  ;;  %v1453_v36 = vpack.c.bf16 %v956_v32, %v955_v31 }
 0x3d7   :  { %1319 = vmatmul.mubr.msk.f32.vlgmr.msra.gmra.mrb[2].mxu1 %vm101_vm0, %v579_v38  ;;  %v958_v38 = vld [vmem:[%s1786_s6 + $0x28] sm:$0xff] }
 0x3d8   :  { %1448 = vmatpush3.bf16.msra.mxu1 %v1445_v19  ;;  %v1457_v39 = vpack.c.bf16 %v958_v38, %v957_v37 }
 0x3d9   :  { %1450 = vmatprep.subr.bf16.mxu1 %v1449_v22 }
 0x4aa   :  { %v1320_v53 = vpop.f32.mrb[2].mxu1 }
 0x4ab   :  { %v759_v54 = vadd.f32 %v1320_v53, %v1170_v52  ;;  %v745_v55 = vpop.f32.mrb[3].mxu1 }
 0x4ac   :  { %v758_v56 = vadd.f32 %v1170_v52, %v745_v55 }
 0x4ad   :  { %v761_v57 = vmax.f32 %v759_v54, 0.0 }
 0x4ae   :  { %v760_v58 = vmax.f32 %v758_v56, 0.0 }
 0x4af   :  { %v778_v59 = vrot.slane %v761_v57, 1 }
 0x4b0   :  { %v777_v60 = vrot.slane %v760_v58, 1 }
 0x4b1   :  { %v782_v61 = vsel %vm585_vm9, %v778_v59, 0.0 }
 0x4b2   :  { %v779_v0 = vsel %vm585_vm9, %v777_v60, %v778_v59  ;;  %v784_v2 = vmul.f32 %v1671_v43, %v782_v61 }
 0x4b3   :  { %v783_v1 = vmul.f32 %v1668_v42, %v779_v0 }
 0x4b5   :  { %1329 = vmatprep.mubr.msk.f32.mxu0 %vm411_vm6, %v783_v1 }
 0x4b6   :  { %1330 = vmatmul.mubr.msk.f32.vlgmr.msra.gmra.mrb[4].mxu0 %vm411_vm6, %v784_v2 }
 0x4b7   :  { %1432 = vmatpush3.bf16.msra.mxu0 %v1429_v51  ;;  %1348 = vmatprep.mubr.msk.f32.mxu0 %vm296_vm5, %v760_v58 }
 0x4b8   :  { %1434 = vmatprep.subr.bf16.mxu0 %v1433_v3 }
 0x4bb   :  { %1436 = vmatpush3.bf16.msra.mxu0 %v1433_v3 }
 0x4bc   :  { %1438 = vmatprep.subr.bf16.mxu0 %v1437_v6 }
 0x4bf   :  { %1440 = vmatpush3.bf16.msra.mxu0 %v1437_v6 }
 0x4c0   :  { %1442 = vmatprep.subr.bf16.mxu0 %v1441_v15 }
 0x4c3   :  { %1444 = vmatpush3.bf16.msra.mxu0 %v1441_v15 }
 0x4c6   :  { %1349 = vmatmul.mubr.msk.f32.vlgmr.msra.gmra.mrb[4].mxu0 %vm296_vm5, %v761_v57 }
 0x599   :  { %v1350_v24 = vpop.f32.mrb[4].mxu0 }
 0x59a   :  { %v950_v25 = vadd.f32 %v1350_v24, %v1175_v23  ;;  %v936_v26 = vpop.f32.mrb[5].mxu0 }
 0x59b   :  { %v949_v27 = vadd.f32 %v1175_v23, %v936_v26 }
 0x59c   :  { %v952_v28 = vmax.f32 %v950_v25, 0.0 }
 0x59d   :  { %v951_v13 = vmax.f32 %v949_v27, 0.0 }
 0x59e   :  { %v967_v17 = vrot.slane %v952_v28, 1 }
 0x59f   :  { %v966_v29 = vrot.slane %v951_v13, 1 }
 0x5a0   :  { %v971_v30 = vsel %vm585_vm9, %v967_v17, 0.0 }
 0x5a1   :  { %v968_v33 = vsel %vm585_vm9, %v966_v29, %v967_v17  ;;  %v973_v35 = vmul.f32 %v1671_v43, %v971_v30  ;;  %v1180_v43 = vld [vmem:[%s1786_s6 + $0x50] ss:$0 sm:$0xff] }
 0x5a2   :  { %v972_v34 = vmul.f32 %v1668_v42, %v968_v33  ;;  %v1461_v42 = vpack.c.bf16 %v960_v41, %v959_v40 }
 0x5a4   :  { %1355 = vmatprep.mubr.msk.f32.mxu1 %vm214_vm4, %v972_v34 }
 0x5a5   :  { %1356 = vmatmul.mubr.msk.f32.vlgmr.msra.gmra.mrb[4].mxu1 %vm214_vm4, %v973_v35 }
 0x5a6   :  { %1452 = vmatpush3.bf16.msra.mxu1 %v1449_v22  ;;  %1374 = vmatprep.mubr.msk.f32.mxu1 %vm296_vm5, %v951_v13 }
 0x5a7   :  { %1454 = vmatprep.subr.bf16.mxu1 %v1453_v36 }
 0x5aa   :  { %1456 = vmatpush3.bf16.msra.mxu1 %v1453_v36 }
 0x5ab   :  { %1458 = vmatprep.subr.bf16.mxu1 %v1457_v39 }
 0x5ae   :  { %1460 = vmatpush3.bf16.msra.mxu1 %v1457_v39 }
 0x5af   :  { %1462 = vmatprep.subr.bf16.mxu1 %v1461_v42 }
 0x5b2   :  { %1464 = vmatpush3.bf16.msra.mxu1 %v1461_v42 }
 0x5b5   :  { %1375 = vmatmul.mubr.msk.f32.vlgmr.msra.gmra.mrb[4].mxu1 %vm296_vm5, %v952_v28 }
 0x688   :  { %v1376_v44 = vpop.f32.mrb[4].mxu1 }
 0x689   :  { %v1139_v45 = vadd.f32 %v1376_v44, %v1180_v43  ;;  %v1125_v8 = vpop.f32.mrb[5].mxu1 }
 0x68a   :  { %v1138_v10 = vadd.f32 %v1180_v43, %v1125_v8 }
 0x68b   :  { %1482 = vtanh.f32 %v1139_v45 }
 0x68c   :  { %1484 = vtanh.f32 %v1138_v10 }
 0x695   :  { %v1483_v9 = vpop.eup %1482 }
 0x696   :  { %v1485_v11 = vpop.eup %1484  ;;  %1143 = vst.msk [vmem:[%s1787_s7 + $0x8] sm:$0xff] %vm101_vm0, %v1483_v9 }
 0x697   :  { %1142 = vst.msk [vmem:[%s1787_s7] sm:$0xff] %vm101_vm0, %v1485_v11 }

</bundles_post_ra>
